<compile_context>
chip_gen: v7x
topology: tpu7x:2x2x1
jax: 0.10.0
libtpu: 0.0.40
codegen_flags: <defaults>
</compile_context>

<pallas_src>
import numpy as np
import jax
import jax.numpy as jnp
from jax.experimental import pallas as pl
from jax.experimental.pallas import tpu as pltpu

# ---- model hyperparameters (InfluenceNetwork(n_motifs=32, w_motif=10, ...)) ----
L_CH = 32               # n_motifs
W_K = 5                 # w_motif // 2 (odd)
AR = 1                  # dilation
PAD = AR * (W_K - 1) // 2
BN_EPS = 1e-5           # torch.nn.BatchNorm1d default eps
B_PACK = 4              # batch elements lane-packed per grid step
LANES = B_PACK * L_CH   # 128 — one full TPU lane width


# --------------------------------------------------------------------------------------
# Pallas kernel: one grid step processes B_PACK batch elements lane-packed to 128 lanes.
# --------------------------------------------------------------------------------------
def influence_motifs_kernel(x_ref, ew_ref, eb_ref, bns_ref, bnb_ref,
                            cw_ref, cb_ref, thr_ref, out_ref):
    # x_ref:   (1, S, B_PACK*4)          bf16, lane-packed one-hot-ish input
    # ew_ref:  (B_PACK*4, 128)           bf16, block-diag embed weight
    # eb_ref:  (1, 128)                  f32, embed bias (tiled per packed batch)
    # bns_ref: (2, 128)  /  bnb_ref: (2, 128)   f32, folded BN scale / shift
    # cw_ref:  (2, W_K*128, 128)         bf16, block-diag im2col conv weights
    # cb_ref:  (2, 128)                  f32, conv biases (tiled)
    # thr_ref: (1, 128)                  f32, SpatiallySparse thresholds (tiled)
    # out_ref: (1, S, 128)               f32, sparse motif activations (lane-dense)
    S = x_ref.shape[1]

    # initial_embed: pointwise conv == one (S, 16) @ (16, 128) MXU matmul
    h = jnp.dot(x_ref[0], ew_ref[...],
                preferred_element_type=jnp.float32) + eb_ref[...]          # (S, 128) f32

    def bn_relu(v, j):
        # eval-mode BatchNorm pre-folded to scale/shift in the wrapper, fused with ReLU
        return jnp.maximum(v * bns_ref[j:j + 1, :] + bnb_ref[j:j + 1, :], 0.0)

    def conv(v, j):
        # 'same' width-5 dilated conv as a single im2col matmul:
        #   (S, W_K*128) bf16 slab  @  (W_K*128, 128) bf16 block-diag weight -> f32
        zpad = jnp.zeros((PAD, LANES), jnp.float32)
        vp = jnp.concatenate([zpad, v, zpad], axis=0)                      # (S+2*PAD, 128)
        slab = jnp.concatenate([vp[t:t + S, :] for t in range(W_K)],
                               axis=1).astype(jnp.bfloat16)                # (S, W_K*128)
        return jnp.dot(slab, cw_ref[j],
                       preferred_element_type=jnp.float32) + cb_ref[j:j + 1, :]

    # motifs_layer: ResidualUnit(l, w, ar) = BN->ReLU->conv1->BN->ReLU->conv2 + input
    c1 = conv(bn_relu(h, 0), 0)
    c2 = conv(bn_relu(c1, 1), 1)
    h = h + c2

    # SpatiallySparse (by_magnitude=False, discontinuity_mode='none', eval):
    #   x * (x > thresholds)
    out_ref[0] = jnp.where(h > thr_ref[...], h, 0.0)


# --------------------------------------------------------------------------------------
# Parameter construction / packing
# --------------------------------------------------------------------------------------
def init_params(key):
    """Deterministic synthetic parameters; shapes follow the PyTorch modules."""
    ks = jax.random.split(key, 8)
    return {
        # nn.Conv1d(4, n_motifs, 1).weight  (out, in, kW)
        "embed_w": 0.3 * jax.random.normal(ks[0], (L_CH, 4, 1), jnp.float32),
        "embed_b": 0.1 * jax.random.normal(ks[1], (L_CH,), jnp.float32),
        # ResidualUnit conv1 / conv2: (2, out, in, kW)
        "conv_w": 0.08 * jax.random.normal(ks[2], (2, L_CH, L_CH, W_K), jnp.float32),
        "conv_b": 0.05 * jax.random.normal(ks[3], (2, L_CH), jnp.float32),
        # ResidualUnit normalize1 / normalize2
        "bn_gamma": 1.0 + 0.1 * jax.random.normal(ks[4], (2, L_CH), jnp.float32),
        "bn_beta": 0.1 * jax.random.normal(ks[5], (2, L_CH), jnp.float32),
        "bn_mean": 0.1 * jax.random.normal(ks[6], (2, L_CH), jnp.float32),
        "bn_var": 0.5 + jax.random.uniform(ks[7], (2, L_CH), dtype=jnp.float32),
        # SpatiallySparse.thresholds: torch init zeros, requires_grad=False
        "thresholds": jnp.zeros((L_CH,), jnp.float32),
    }


def _blockdiag(w):
    """(..., Cin, Cout) -> (..., B_PACK*Cin, B_PACK*Cout) block-diagonal replication."""
    eye_b = jnp.eye(B_PACK, dtype=w.dtype)
    bd = jnp.einsum('ab,...io->...aibo', eye_b, w)
    sh = w.shape
    return bd.reshape(*sh[:-2], B_PACK * sh[-2], B_PACK * sh[-1])


def _pack_for_kernel(p):
    # embed weight: (out, in, 1) -> (in, out) -> block-diag (16, 128), bf16 for the MXU
    ew = jnp.transpose(p["embed_w"][:, :, 0])                       # (4, L_CH)
    ew_p = _blockdiag(ew).astype(jnp.bfloat16)                      # (16, 128)
    eb_p = jnp.tile(p["embed_b"], (B_PACK,))[None, :]               # (1, 128)

    # fold eval-mode BatchNorm into per-channel scale/shift
    scale = p["bn_gamma"] * jax.lax.rsqrt(p["bn_var"] + BN_EPS)     # (2, L_CH)
    shift = p["bn_beta"] - p["bn_mean"] * scale
    bns_p = jnp.tile(scale, (1, B_PACK))                            # (2, 128)
    bnb_p = jnp.tile(shift, (1, B_PACK))                            # (2, 128)

    # conv weights: (2, out, in, W) -> per-tap (in, out) -> block-diag -> im2col rows
    cw_taps = jnp.transpose(p["conv_w"], (0, 3, 2, 1))              # (2, W, Cin, Cout)
    cw_bd = _blockdiag(cw_taps)                                     # (2, W, 128, 128)
    cw_p = cw_bd.reshape(2, W_K * LANES, LANES).astype(jnp.bfloat16)

    cb_p = jnp.tile(p["conv_b"], (1, B_PACK))                       # (2, 128)
    thr_p = jnp.tile(p["thresholds"], (B_PACK,))[None, :]           # (1, 128)
    return ew_p, eb_p, bns_p, bnb_p, cw_p, cb_p, thr_p


# --------------------------------------------------------------------------------------
# Wrapper
# --------------------------------------------------------------------------------------
def influence_motifs_forward(x_nlc, params):
    """x_nlc: (N, S, 4) float32 — same layout InfluenceNetwork.forward receives.
    Returns the sparse motif activations in (N, S, n_motifs) layout (i.e. the value
    that would feed the positional encoding / transformer)."""
    N, S, c_in = x_nlc.shape
    assert c_in == 4

    # pad batch to a multiple of B_PACK, then lane-pack 4 batch items -> 16 input lanes
    NP = -(-N // B_PACK) * B_PACK
    if NP != N:
        x_nlc = jnp.concatenate(
            [x_nlc, jnp.zeros((NP - N, S, 4), x_nlc.dtype)], axis=0)
    NB = NP // B_PACK
    xp = x_nlc.reshape(NB, B_PACK, S, 4)
    xp = jnp.transpose(xp, (0, 2, 1, 3)).reshape(NB, S, B_PACK * 4)
    xp = xp.astype(jnp.bfloat16)

    ew, eb, bns, bnb, cw, cb, thr = _pack_for_kernel(params)

    def full_spec(a):
        nd = a.ndim
        return pl.BlockSpec(a.shape, lambda b: (0,) * nd)

    grid_spec = pltpu.PrefetchScalarGridSpec(
        num_scalar_prefetch=0,
        grid=(NB,),
        in_specs=[
            pl.BlockSpec((1, S, B_PACK * 4), lambda b: (b, 0, 0)),
            full_spec(ew), full_spec(eb), full_spec(bns), full_spec(bnb),
            full_spec(cw), full_spec(cb), full_spec(thr),
        ],
        out_specs=pl.BlockSpec((1, S, LANES), lambda b: (b, 0, 0)),
    )

    out_p = pl.pallas_call(
        influence_motifs_kernel,
        out_shape=jax.ShapeDtypeStruct((NB, S, LANES), jnp.float32),
        grid_spec=grid_spec,
        compiler_params=pltpu.CompilerParams(dimension_semantics=("parallel",)),
    )(xp, ew, eb, bns, bnb, cw, cb, thr)

    # unpack lanes back to batch: column b*L_CH + c  <->  batch g*B_PACK + b, channel c
    out = out_p.reshape(NB, S, B_PACK, L_CH)
    out = jnp.transpose(out, (0, 2, 1, 3)).reshape(NP, S, L_CH)
    return out[:N]


# --------------------------------------------------------------------------------------
# Pure-JAX reference (mirrors the PyTorch semantics, NCL internally like the module)
# --------------------------------------------------------------------------------------
def reference_forward(x_nlc, p):
    x = jnp.transpose(x_nlc, (0, 2, 1))                            # (N, 4, S)

    def conv1d(v, w, b, dil, pad):
        y = jax.lax.conv_general_dilated(
            v, w, window_strides=(1,), padding=[(pad, pad)],
            rhs_dilation=(dil,), dimension_numbers=("NCH", "OIH", "NCH"))
        return y + b[None, :, None]

    def bn(v, j):
        g, be = p["bn_gamma"][j], p["bn_beta"][j]
        m, var = p["bn_mean"][j], p["bn_var"][j]
        return ((v - m[None, :, None]) * jax.lax.rsqrt(var + BN_EPS)[None, :, None]
                * g[None, :, None] + be[None, :, None])

    h = conv1d(x, p["embed_w"], p["embed_b"], 1, 0)                # initial_embed
    res = h                                                        # ResidualUnit
    c1 = conv1d(jax.nn.relu(bn(h, 0)), p["conv_w"][0], p["conv_b"][0], AR, PAD)
    c2 = conv1d(jax.nn.relu(bn(c1, 1)), p["conv_w"][1], p["conv_b"][1], AR, PAD)
    h = c2 + res
    out = h * (h > p["thresholds"][None, :, None]).astype(h.dtype)  # SpatiallySparse eval
    return jnp.transpose(out, (0, 2, 1))                           # back to (N, S, C)


if __name__ == "__main__":
    key = jax.random.PRNGKey(0)
    kx, kp = jax.random.split(key)
    params = init_params(kp)

    # small shapes: (batch, seq, 4) inputs; exercises both the packed (N=4) and the
    # batch-padded (N=2 -> pad to 4) paths.
    for N, S in [(4, 16), (2, 16)]:
        x = jax.random.normal(jax.random.fold_in(kx, N), (N, S, 4), jnp.float32)
        out = jax.block_until_ready(influence_motifs_forward(x, params))
        ref = reference_forward(x, params)
        np.testing.assert_allclose(np.asarray(out), np.asarray(ref),
                                   rtol=3e-2, atol=3e-2)

    print("KERNEL_OK")
</pallas_src>

<mosaic_0001>
module attributes {stable_mosaic.version = 11 : i64} {
  func.func @influence_motifs_kernel(%arg0: i32, %arg1: memref<1x16x16xbf16, #tpu.memory_space<vmem>>, %arg2: memref<16x128xbf16, #tpu.memory_space<vmem>>, %arg3: memref<1x128xf32, #tpu.memory_space<vmem>>, %arg4: memref<2x128xf32, #tpu.memory_space<vmem>>, %arg5: memref<2x128xf32, #tpu.memory_space<vmem>>, %arg6: memref<2x640x128xbf16, #tpu.memory_space<vmem>>, %arg7: memref<2x128xf32, #tpu.memory_space<vmem>>, %arg8: memref<1x128xf32, #tpu.memory_space<vmem>>, %arg9: memref<1x16x128xf32, #tpu.memory_space<vmem>>) attributes {dimension_semantics = [#tpu.dimension_semantics<parallel>], iteration_bounds = array<i64: 1>, scalar_prefetch = 0 : i64, scratch_operands = 0 : i64, tpu.core_type = #tpu.core_type<tc>, window_params = [{transform_indices = @transform_0, window_bounds = array<i64: 1, 16, 16>}, {pipeline_mode = #tpu.pipeline_mode<synchronous>, transform_indices = @transform_1, window_bounds = array<i64: 16, 128>}, {pipeline_mode = #tpu.pipeline_mode<synchronous>, transform_indices = @transform_2, window_bounds = array<i64: 1, 128>}, {pipeline_mode = #tpu.pipeline_mode<synchronous>, transform_indices = @transform_3, window_bounds = array<i64: 2, 128>}, {pipeline_mode = #tpu.pipeline_mode<synchronous>, transform_indices = @transform_4, window_bounds = array<i64: 2, 128>}, {pipeline_mode = #tpu.pipeline_mode<synchronous>, transform_indices = @transform_5, window_bounds = array<i64: 2, 640, 128>}, {pipeline_mode = #tpu.pipeline_mode<synchronous>, transform_indices = @transform_6, window_bounds = array<i64: 2, 128>}, {pipeline_mode = #tpu.pipeline_mode<synchronous>, transform_indices = @transform_7, window_bounds = array<i64: 1, 128>}, {transform_indices = @transform_8, window_bounds = array<i64: 1, 16, 128>}]} {
    %c0 = arith.constant 0 : index
    %c0_0 = arith.constant 0 : index
    %c0_1 = arith.constant 0 : index
    %0 = vector.load %arg1[%c0, %c0_0, %c0_1] : memref<1x16x16xbf16, #tpu.memory_space<vmem>>, vector<1x16x16xbf16>
    %1 = vector.shape_cast %0 : vector<1x16x16xbf16> to vector<16x16xbf16>
    %c0_2 = arith.constant 0 : index
    %c0_3 = arith.constant 0 : index
    %2 = vector.load %arg2[%c0_2, %c0_3] : memref<16x128xbf16, #tpu.memory_space<vmem>>, vector<16x128xbf16>
    %cst = arith.constant dense<0.000000e+00> : vector<16x128xf32>
    %3 = tpu.matmul %1, %2, %cst {dimension_numbers = #tpu.dot_dimension_numbers<[1], [0], [0], [1], [0, 0, 1, 1], [], []>} : vector<16x16xbf16>, vector<16x128xbf16>, vector<16x128xf32> -> vector<16x128xf32>
    %c0_4 = arith.constant 0 : index
    %c0_5 = arith.constant 0 : index
    %4 = vector.load %arg3[%c0_4, %c0_5] : memref<1x128xf32, #tpu.memory_space<vmem>>, vector<1x128xf32>
    %5 = vector.broadcast %4 : vector<1x128xf32> to vector<16x128xf32>
    %6 = arith.addf %3, %5 : vector<16x128xf32>
    %c0_6 = arith.constant 0 : index
    %c0_7 = arith.constant 0 : index
    %7 = vector.load %arg4[%c0_6, %c0_7] : memref<2x128xf32, #tpu.memory_space<vmem>>, vector<1x128xf32>
    %8 = vector.broadcast %7 : vector<1x128xf32> to vector<16x128xf32>
    %9 = arith.mulf %6, %8 : vector<16x128xf32>
    %c0_8 = arith.constant 0 : index
    %c0_9 = arith.constant 0 : index
    %10 = vector.load %arg5[%c0_8, %c0_9] : memref<2x128xf32, #tpu.memory_space<vmem>>, vector<1x128xf32>
    %11 = vector.broadcast %10 : vector<1x128xf32> to vector<16x128xf32>
    %12 = arith.addf %9, %11 : vector<16x128xf32>
    %cst_10 = arith.constant 0.000000e+00 : f32
    %13 = vector.broadcast %cst_10 : f32 to vector<16x128xf32>
    %14 = arith.maximumf %12, %13 : vector<16x128xf32>
    %cst_11 = arith.constant 0.000000e+00 : f32
    %15 = vector.broadcast %cst_11 : f32 to vector<2x128xf32>
    %16 = tpu.concatenate %15, %14, %15 in 0 : vector<2x128xf32>, vector<16x128xf32>, vector<2x128xf32> -> vector<20x128xf32>
    %17 = vector.extract_strided_slice %16 {offsets = [0, 0], sizes = [16, 128], strides = [1, 1]} : vector<20x128xf32> to vector<16x128xf32>
    %18 = vector.extract_strided_slice %16 {offsets = [1, 0], sizes = [16, 128], strides = [1, 1]} : vector<20x128xf32> to vector<16x128xf32>
    %19 = vector.extract_strided_slice %16 {offsets = [2, 0], sizes = [16, 128], strides = [1, 1]} : vector<20x128xf32> to vector<16x128xf32>
    %20 = vector.extract_strided_slice %16 {offsets = [3, 0], sizes = [16, 128], strides = [1, 1]} : vector<20x128xf32> to vector<16x128xf32>
    %21 = vector.extract_strided_slice %16 {offsets = [4, 0], sizes = [16, 128], strides = [1, 1]} : vector<20x128xf32> to vector<16x128xf32>
    %22 = tpu.concatenate %17, %18, %19, %20, %21 in 1 : vector<16x128xf32>, vector<16x128xf32>, vector<16x128xf32>, vector<16x128xf32>, vector<16x128xf32> -> vector<16x640xf32>
    %23 = arith.truncf %22 : vector<16x640xf32> to vector<16x640xbf16>
    %c0_12 = arith.constant 0 : index
    %c0_13 = arith.constant 0 : index
    %c0_14 = arith.constant 0 : index
    %24 = vector.load %arg6[%c0_12, %c0_13, %c0_14] : memref<2x640x128xbf16, #tpu.memory_space<vmem>>, vector<1x640x128xbf16>
    %25 = vector.shape_cast %24 : vector<1x640x128xbf16> to vector<640x128xbf16>
    %cst_15 = arith.constant dense<0.000000e+00> : vector<16x128xf32>
    %26 = tpu.matmul %23, %25, %cst_15 {dimension_numbers = #tpu.dot_dimension_numbers<[1], [0], [0], [1], [0, 0, 1, 1], [], []>} : vector<16x640xbf16>, vector<640x128xbf16>, vector<16x128xf32> -> vector<16x128xf32>
    %c0_16 = arith.constant 0 : index
    %c0_17 = arith.constant 0 : index
    %27 = vector.load %arg7[%c0_16, %c0_17] : memref<2x128xf32, #tpu.memory_space<vmem>>, vector<1x128xf32>
    %28 = vector.broadcast %27 : vector<1x128xf32> to vector<16x128xf32>
    %29 = arith.addf %26, %28 : vector<16x128xf32>
    %c1 = arith.constant 1 : index
    %c0_18 = arith.constant 0 : index
    %30 = vector.load %arg4[%c1, %c0_18] : memref<2x128xf32, #tpu.memory_space<vmem>>, vector<1x128xf32>
    %31 = vector.broadcast %30 : vector<1x128xf32> to vector<16x128xf32>
    %32 = arith.mulf %29, %31 : vector<16x128xf32>
    %c1_19 = arith.constant 1 : index
    %c0_20 = arith.constant 0 : index
    %33 = vector.load %arg5[%c1_19, %c0_20] : memref<2x128xf32, #tpu.memory_space<vmem>>, vector<1x128xf32>
    %34 = vector.broadcast %33 : vector<1x128xf32> to vector<16x128xf32>
    %35 = arith.addf %32, %34 : vector<16x128xf32>
    %cst_21 = arith.constant 0.000000e+00 : f32
    %36 = vector.broadcast %cst_21 : f32 to vector<16x128xf32>
    %37 = arith.maximumf %35, %36 : vector<16x128xf32>
    %cst_22 = arith.constant 0.000000e+00 : f32
    %38 = vector.broadcast %cst_22 : f32 to vector<2x128xf32>
    %39 = tpu.concatenate %38, %37, %38 in 0 : vector<2x128xf32>, vector<16x128xf32>, vector<2x128xf32> -> vector<20x128xf32>
    %40 = vector.extract_strided_slice %39 {offsets = [0, 0], sizes = [16, 128], strides = [1, 1]} : vector<20x128xf32> to vector<16x128xf32>
    %41 = vector.extract_strided_slice %39 {offsets = [1, 0], sizes = [16, 128], strides = [1, 1]} : vector<20x128xf32> to vector<16x128xf32>
    %42 = vector.extract_strided_slice %39 {offsets = [2, 0], sizes = [16, 128], strides = [1, 1]} : vector<20x128xf32> to vector<16x128xf32>
    %43 = vector.extract_strided_slice %39 {offsets = [3, 0], sizes = [16, 128], strides = [1, 1]} : vector<20x128xf32> to vector<16x128xf32>
    %44 = vector.extract_strided_slice %39 {offsets = [4, 0], sizes = [16, 128], strides = [1, 1]} : vector<20x128xf32> to vector<16x128xf32>
    %45 = tpu.concatenate %40, %41, %42, %43, %44 in 1 : vector<16x128xf32>, vector<16x128xf32>, vector<16x128xf32>, vector<16x128xf32>, vector<16x128xf32> -> vector<16x640xf32>
    %46 = arith.truncf %45 : vector<16x640xf32> to vector<16x640xbf16>
    %c1_23 = arith.constant 1 : index
    %c0_24 = arith.constant 0 : index
    %c0_25 = arith.constant 0 : index
    %47 = vector.load %arg6[%c1_23, %c0_24, %c0_25] : memref<2x640x128xbf16, #tpu.memory_space<vmem>>, vector<1x640x128xbf16>
    %48 = vector.shape_cast %47 : vector<1x640x128xbf16> to vector<640x128xbf16>
    %cst_26 = arith.constant dense<0.000000e+00> : vector<16x128xf32>
    %49 = tpu.matmul %46, %48, %cst_26 {dimension_numbers = #tpu.dot_dimension_numbers<[1], [0], [0], [1], [0, 0, 1, 1], [], []>} : vector<16x640xbf16>, vector<640x128xbf16>, vector<16x128xf32> -> vector<16x128xf32>
    %c1_27 = arith.constant 1 : index
    %c0_28 = arith.constant 0 : index
    %50 = vector.load %arg7[%c1_27, %c0_28] : memref<2x128xf32, #tpu.memory_space<vmem>>, vector<1x128xf32>
    %51 = vector.broadcast %50 : vector<1x128xf32> to vector<16x128xf32>
    %52 = arith.addf %49, %51 : vector<16x128xf32>
    %53 = arith.addf %6, %52 : vector<16x128xf32>
    %c0_29 = arith.constant 0 : index
    %c0_30 = arith.constant 0 : index
    %54 = vector.load %arg8[%c0_29, %c0_30] : memref<1x128xf32, #tpu.memory_space<vmem>>, vector<1x128xf32>
    %55 = vector.broadcast %54 : vector<1x128xf32> to vector<16x128xf32>
    %56 = arith.cmpf ogt, %53, %55 : vector<16x128xf32>
    %cst_31 = arith.constant 0.000000e+00 : f32
    %57 = vector.broadcast %cst_31 : f32 to vector<16x128xf32>
    %58 = arith.select %56, %53, %57 : vector<16x128xi1>, vector<16x128xf32>
    %c0_32 = arith.constant 0 : index
    %c0_33 = arith.constant 0 : index
    %c0_34 = arith.constant 0 : index
    %59 = vector.load %arg9[%c0_32, %c0_33, %c0_34] : memref<1x16x128xf32, #tpu.memory_space<vmem>>, vector<1x16x128xf32>
    %60 = vector.shape_cast %59 : vector<1x16x128xf32> to vector<16x128xf32>
    %61 = vector.shape_cast %58 : vector<16x128xf32> to vector<1x16x128xf32>
    tpu.vector_store %arg9[%c0_32, %c0_33, %c0_34], %61 {strides = array<i32>} : memref<1x16x128xf32, #tpu.memory_space<vmem>>, vector<1x16x128xf32>,
    return
  }
  func.func @transform_0(%arg0: i32) -> (i32, i32, i32) {
    %c0_i32 = arith.constant 0 : i32
    %c0_i32_0 = arith.constant 0 : i32
    %c0_i32_1 = arith.constant 0 : i32
    return %arg0, %c0_i32, %c0_i32_0 : i32, i32, i32
  }
  func.func @transform_1(%arg0: i32) -> (i32, i32) {
    %c0_i32 = arith.constant 0 : i32
    %c0_i32_0 = arith.constant 0 : i32
    %c0_i32_1 = arith.constant 0 : i32
    return %c0_i32, %c0_i32_0 : i32, i32
  }
  func.func @transform_2(%arg0: i32) -> (i32, i32) {
    %c0_i32 = arith.constant 0 : i32
    %c0_i32_0 = arith.constant 0 : i32
    %c0_i32_1 = arith.constant 0 : i32
    return %c0_i32, %c0_i32_0 : i32, i32
  }
  func.func @transform_3(%arg0: i32) -> (i32, i32) {
    %c0_i32 = arith.constant 0 : i32
    %c0_i32_0 = arith.constant 0 : i32
    %c0_i32_1 = arith.constant 0 : i32
    return %c0_i32, %c0_i32_0 : i32, i32
  }
  func.func @transform_4(%arg0: i32) -> (i32, i32) {
    %c0_i32 = arith.constant 0 : i32
    %c0_i32_0 = arith.constant 0 : i32
    %c0_i32_1 = arith.constant 0 : i32
    return %c0_i32, %c0_i32_0 : i32, i32
  }
  func.func @transform_5(%arg0: i32) -> (i32, i32, i32) {
    %c0_i32 = arith.constant 0 : i32
    %c0_i32_0 = arith.constant 0 : i32
    %c0_i32_1 = arith.constant 0 : i32
    %c0_i32_2 = arith.constant 0 : i32
    return %c0_i32, %c0_i32_0, %c0_i32_1 : i32, i32, i32
  }
  func.func @transform_6(%arg0: i32) -> (i32, i32) {
    %c0_i32 = arith.constant 0 : i32
    %c0_i32_0 = arith.constant 0 : i32
    %c0_i32_1 = arith.constant 0 : i32
    return %c0_i32, %c0_i32_0 : i32, i32
  }
  func.func @transform_7(%arg0: i32) -> (i32, i32) {
    %c0_i32 = arith.constant 0 : i32
    %c0_i32_0 = arith.constant 0 : i32
    %c0_i32_1 = arith.constant 0 : i32
    return %c0_i32, %c0_i32_0 : i32, i32
  }
  func.func @transform_8(%arg0: i32) -> (i32, i32, i32) {
    %c0_i32 = arith.constant 0 : i32
    %c0_i32_0 = arith.constant 0 : i32
    %c0_i32_1 = arith.constant 0 : i32
    return %arg0, %c0_i32, %c0_i32_0 : i32, i32, i32
  }
}

</mosaic_0001>

<bundles_post_ra>
// kernel: tpu_custom_call.1
= control target key start
LH: loop header
LB: loop body
LE: loop exit
PB: predicated region body
PF: predicated region fallthrough
CT: control target
= control target key end

     0   :  { %13 = vsyncpa [#allocation3], 0  ;;  %s1842_s0 = inlined_call_operand.hbm [shape: bf16[1,16,16], index: 0, kind: input, shape index: {}]   ;;  %s1843_s1 = inlined_call_operand.hbm [shape: bf16[16,128], index: 1, kind: input, shape index: {}]   ;;  %s1844_s2 = inlined_call_operand.vmem [shape: f32[1,128], index: 2, kind: input, shape index: {}]   ;;  %s1845_s3 = inlined_call_operand.vmem [shape: f32[2,128], index: 3, kind: input, shape index: {}]   ;;  %s1846_s4 = inlined_call_operand.vmem [shape: f32[2,128], index: 4, kind: input, shape index: {}]   ;;  %s1847_s5 = inlined_call_operand.hbm [shape: bf16[2,640,128], index: 5, kind: input, shape index: {}]   ;;  %s1848_s6 = inlined_call_operand.vmem [shape: f32[2,128], index: 6, kind: input, shape index: {}]   ;;  %s1849_s7 = inlined_call_operand.vmem [shape: f32[1,128], index: 7, kind: input, shape index: {}]   ;;  %s1850_s8 = inlined_call_operand.hbm [shape: f32[1,16,128], index: 8, kind: output, shape index: {}]  }
   0x1   :  { %14 = vsyncpa [#allocation6], 0 }
   0x2   :  { %15 = vsyncpa [#allocation4], 0  ;;  %s1636_s27 = smov [#allocation5]   ;;  %s1637_s29 = smov [#allocation2]  }
   0x3   :  { %s33_s28 = sshll.u32 %s1636_s27, 4  ;;  %s21_s30 = sshll.u32 %s1637_s29, 4  ;;  %s34_s28 = int_to_ptr.vmem [resolvable:$true] %s33_s28  ;;  %s1692_s30 = int_to_ptr.vmem [resolvable:$true] %s21_s30 }
   0x4   :  { %s1542_s11 = scalar_lea.hbm %s1843_s1, 128 }
   0x5   :  { %p1543_p0 = scmp.ne.s32.totalorder %s1843_s1, %s1542_s11  ;;  %p1546_p1 = scmp.lt.u32.totalorder %s1542_s11, %s1843_s1 }
   0x7   :  { %p1548_p2 = pnand %p1546_p1, %p1543_p0 }
   0x9   :  { %1551 = shalt.err (!%p1548_p2)
}
   0xa   :  { %s1552_s16 = scalar_lea.vmem %s34_s28, 128  ;;  %p1557_p4 = scmp.lt.s32.totalorder %s34_s28, %s34_s28 }
   0xb   :  { %p1553_p3 = scmp.ne.s32.totalorder %s34_s28, %s1552_s16  ;;  %p1558_p5 = scmp.lt.s32.totalorder %s1552_s16, %s1552_s16 }
   0xd   :  { %p1559_p6 = por %p1558_p5, %p1557_p4 }
   0xf   :  { %p1560_p7 = pnand %p1559_p6, %p1553_p3 }
  0x11   :  { %1563 = shalt.err (!%p1560_p7)
}
  0x12   :  { %s1638_s17 = smov 64   ;;  %s1639_s18 = smov 4  }
  0x13   :  { %39 = dma.hbm_to_vmem [thread:$0]  %s1843_s1, 128, %s34_s28, [#allocation6], %s1638_s17, %s1638_s17, %s1639_s18  }
  0x14   :  { %s1564_s23 = scalar_lea.hbm %s1842_s0, 128 }
  0x15   :  { %p1565_p8 = scmp.ne.s32.totalorder %s1842_s0, %s1564_s23  ;;  %p1568_p9 = scmp.lt.u32.totalorder %s1564_s23, %s1842_s0 }
  0x17   :  { %p1570_p10 = pnand %p1568_p9, %p1565_p8 }
  0x19   :  { %1573 = shalt.err (!%p1570_p10)
}
  0x1a   :  { %s1574_s29 = scalar_lea.vmem %s1692_s30, 128  ;;  %p1579_p12 = scmp.lt.s32.totalorder %s1692_s30, %s1692_s30 }
  0x1b   :  { %p1575_p11 = scmp.ne.s32.totalorder %s1692_s30, %s1574_s29  ;;  %p1580_p13 = scmp.lt.s32.totalorder %s1574_s29, %s1574_s29 }
  0x1d   :  { %p1581_p0 = por %p1580_p13, %p1579_p12 }
  0x1f   :  { %p1582_p1 = pnand %p1581_p0, %p1575_p11 }
  0x21   :  { %1585 = shalt.err (!%p1582_p1)
}
  0x22   :  { %27 = dma.hbm_to_vmem [thread:$0]  %s1842_s0, 128, %s1692_s30, [#allocation3], %s1638_s17, %s1638_s17, %s1639_s18  }
  0x23   :  { %s1640_s9 = smov [#allocation7]   ;;  %s1586_s13 = scalar_lea.hbm %s1847_s5, 10240 }
  0x24   :  { %s51_s10 = sshll.u32 %s1640_s9, 4  ;;  %p1587_p2 = scmp.ne.s32.totalorder %s1847_s5, %s1586_s13  ;;  %s52_s10 = int_to_ptr.vmem [resolvable:$true] %s51_s10 }
  0x25   :  { %p1590_p3 = scmp.lt.u32.totalorder %s1586_s13, %s1847_s5 }
  0x27   :  { %p1592_p4 = pnand %p1590_p3, %p1587_p2 }
  0x29   :  { %1595 = shalt.err (!%p1592_p4)
}
  0x2a   :  { %s1596_s20 = scalar_lea.vmem %s52_s10, 10240  ;;  %p1601_p6 = scmp.lt.s32.totalorder %s52_s10, %s52_s10 }
  0x2b   :  { %p1597_p5 = scmp.ne.s32.totalorder %s52_s10, %s1596_s20  ;;  %p1602_p7 = scmp.lt.s32.totalorder %s1596_s20, %s1596_s20 }
  0x2d   :  { %p1603_p8 = por %p1602_p7, %p1601_p6 }
  0x2f   :  { %p1604_p9 = pnand %p1603_p8, %p1597_p5 }
  0x31   :  { %1607 = shalt.err (!%p1604_p9)
}
  0x32   :  { %57 = dma.hbm_to_vmem [thread:$0]  %s1847_s5, 10240, %s52_s10, [#allocation6], %s1638_s17, %s1638_s17, %s1639_s18  }
  0x33   :  { %1630 = dma.done.wait [#allocation3], 128  }
  0x34   :  { %1631 = vsyncadd [#allocation3], 4294967168 }
  0x35   :  { %1632 = dma.done.wait [#allocation6], 10368  }
  0x36   :  { %1633 = vsyncadd [#allocation6], 4294956928  ;;  %v1641_v0 = vmov 0.0   ;;  %vm1642_vm0 = vmmov 0   ;;  %v1460_v1 = vld [vmem:[#allocation5] sm:$0xff]   ;;  %v1461_v2 = vld [vmem:[#allocation2] sm:$0xff]  }
  0x37   :  { %1403 = vmatprep.subr.bf16.mxu0 %v1641_v0  ;;  %1405 = vmatprep.mubr.msk.bf16.mxu0 %vm1642_vm0, %v1641_v0  ;;  %vm94_vm1 = vcmask 130048   ;;  %v1462_v3 = vld [vmem:[#allocation7 + $0x40] sm:$0xff]   ;;  %v1466_v7 = vld [vmem:[#allocation7 + $0x48] sm:$0xff]   ;;  %v1470_v11 = vld [vmem:[#allocation7 + $0x50] sm:$0xff]   ;;  %vm157_vm2 = vcmask 1041408   ;;  %vm168_vm3 = vcmask 1046528  }
  0x38   :  { %1404 = vmatpush3.bf16.msra.mxu0 %v1460_v1  ;;  %v1463_v4 = vld [vmem:[#allocation7] sm:$0xff]   ;;  %1297 = vmatprep.subr.bf16.mxu1 %v1462_v3  ;;  %v1467_v8 = vld [vmem:[#allocation7 + $0x8] sm:$0xff]   ;;  %v1471_v12 = vld [vmem:[#allocation7 + $0x10] sm:$0xff]   ;;  %vm184_vm4 = vcmask 1044480   ;;  %vm176_vm5 = vcmask 1045504   ;;  %vm1643_vm7 = vmmov 1  }
  0x39   :  { %v1464_v5 = vld [vmem:[#allocation7 + $0xc0] sm:$0xff]   ;;  %1298 = vmatpush3.bf16.msra.mxu1 %v1463_v4  ;;  %v1468_v9 = vld [vmem:[#allocation7 + $0xc8] sm:$0xff]   ;;  %v1472_v13 = vld [vmem:[#allocation7 + $0xd0] sm:$0xff]   ;;  %vm192_vm9 = vcmask 1043456  }
  0x3a   :  { %v1465_v6 = vld [vmem:[#allocation7 + $0x80] sm:$0xff]   ;;  %1319 = vmatprep.subr.bf16.mxu0 %v1464_v5  ;;  %1299 = vmatprep.subr.bf16.mxu1 %v1466_v7  ;;  %v1469_v10 = vld [vmem:[#allocation7 + $0x88] sm:$0xff]   ;;  %v1473_v14 = vld [vmem:[#allocation7 + $0x90] sm:$0xff]  }
  0x3b   :  { %1406 = vmatmul.mubr.msk.bf16.vlgmr.msra.gmra.mrb[0].mxu0 %vm94_vm1, %v1461_v2  ;;  %v1474_v15 = vld [vmem:[#allocation7 + $0x58] sm:$0xff]   ;;  %v1478_v19 = vld [vmem:[#allocation7 + $0x60] sm:$0xff]   ;;  %v1482_v23 = vld [vmem:[#allocation7 + $0x68] sm:$0xff]  }
  0x3c   :  { %1320 = vmatpush3.bf16.msra.mxu0 %v1465_v6  ;;  %v1475_v16 = vld [vmem:[#allocation7 + $0x18] sm:$0xff]   ;;  %v1479_v20 = vld [vmem:[#allocation7 + $0x20] sm:$0xff]   ;;  %v1483_v24 = vld [vmem:[#allocation7 + $0x28] sm:$0xff]  }
  0x3d   :  { %1300 = vmatpush3.bf16.msra.mxu1 %v1467_v8  ;;  %1321 = vmatprep.subr.bf16.mxu0 %v1468_v9  ;;  %v1476_v17 = vld [vmem:[#allocation7 + $0xd8] sm:$0xff]   ;;  %v1480_v21 = vld [vmem:[#allocation7 + $0xe0] sm:$0xff]   ;;  %v1484_v25 = vld [vmem:[#allocation7 + $0xe8] sm:$0xff]  }
  0x3e   :  { %1301 = vmatprep.subr.bf16.mxu1 %v1470_v11  ;;  %v1477_v18 = vld [vmem:[#allocation7 + $0x98] sm:$0xff]   ;;  %v1481_v22 = vld [vmem:[#allocation7 + $0xa0] sm:$0xff]   ;;  %v1485_v26 = vld [vmem:[#allocation7 + $0xa8] sm:$0xff]  }
  0x3f   :  { %v1486_v27 = vld [vmem:[#allocation7 + $0x70] sm:$0xff]   ;;  %v1490_v31 = vld [vmem:[#allocation7 + $0x78] sm:$0xff]   ;;  %vm1243_vm6 = vmneg %vm157_vm2 }
  0x40   :  { %1322 = vmatpush3.bf16.msra.mxu0 %v1469_v10  ;;  %v1487_v28 = vld [vmem:[#allocation7 + $0x30] sm:$0xff]   ;;  %v1491_v32 = vld [vmem:[#allocation7 + $0x38] sm:$0xff]   ;;  %vm1771_vm8 = vmpackc.low %vm1643_vm7, %vm1243_vm6 }
  0x41   :  { %1302 = vmatpush3.bf16.msra.mxu1 %v1471_v12  ;;  %1323 = vmatprep.subr.bf16.mxu0 %v1472_v13  ;;  %v1488_v29 = vld [vmem:[#allocation7 + $0xf0] sm:$0xff]   ;;  %v1492_v33 = vld [vmem:[#allocation7 + $0xf8] sm:$0xff]   ;;  %v1494_v8 = vld [vmem:[#allocation7 + $0x100] sm:$0xff]  }
  0x42   :  { %1303 = vmatprep.subr.bf16.mxu1 %v1474_v15  ;;  %v1489_v30 = vld [vmem:[#allocation7 + $0xb0] sm:$0xff]   ;;  %v1493_v34 = vld [vmem:[#allocation7 + $0xb8] sm:$0xff]   ;;  %v1495_v13 = vld [vmem:[#allocation7 + $0x108] sm:$0xff]  }
  0x43   :  { %v1196_v35 = vld [vmem:[%s1844_s2] ss:$0 sm:$0xff]  ;;  %v1497_v15 = vld [vmem:[#allocation7 + $0x118] sm:$0xff]   ;;  %v1539_v6 = vld [vmem:[#allocation7 + $0x268] sm:$0xff]  }
  0x44   :  { %1324 = vmatpush3.bf16.msra.mxu0 %v1473_v14  ;;  %v1200_v37 = vld [vmem:[%s1845_s3] ss:$0 sm:$0xff] }
  0x45   :  { %1304 = vmatpush3.bf16.msra.mxu1 %v1475_v16  ;;  %1325 = vmatprep.subr.bf16.mxu0 %v1476_v17  ;;  %v1201_v40 = vld [vmem:[%s1846_s4] ss:$0 sm:$0xff]  ;;  %v1498_v16 = vld [vmem:[#allocation7 + $0x120] sm:$0xff]   ;;  %v1499_v17 = vld [vmem:[#allocation7 + $0x128] sm:$0xff]  }
  0x46   :  { %1305 = vmatprep.subr.bf16.mxu1 %v1478_v19  ;;  %v1496_v14 = vld [vmem:[#allocation7 + $0x110] sm:$0xff]  }
  0x48   :  { %1326 = vmatpush3.bf16.msra.mxu0 %v1477_v18  ;;  %v1500_v18 = vld [vmem:[#allocation7 + $0x130] sm:$0xff]  }
  0x49   :  { %1306 = vmatpush3.bf16.msra.mxu1 %v1479_v20  ;;  %1327 = vmatprep.subr.bf16.mxu0 %v1480_v21  ;;  %v1501_v21 = vld [vmem:[#allocation7 + $0x138] sm:$0xff]  }
  0x4a   :  { %1307 = vmatprep.subr.bf16.mxu1 %v1482_v23 }
  0x4c   :  { %1328 = vmatpush3.bf16.msra.mxu0 %v1481_v22 }
  0x4d   :  { %1308 = vmatpush3.bf16.msra.mxu1 %v1483_v24  ;;  %1329 = vmatprep.subr.bf16.mxu0 %v1484_v25 }
  0x4e   :  { %1309 = vmatprep.subr.bf16.mxu1 %v1486_v27  ;;  %v1503_v27 = vld [vmem:[#allocation7 + $0x140] sm:$0xff]  }
  0x50   :  { %1330 = vmatpush3.bf16.msra.mxu0 %v1485_v26  ;;  %v1502_v26 = vld [vmem:[#allocation7 + $0x180] sm:$0xff]  }
  0x51   :  { %1310 = vmatpush3.bf16.msra.mxu1 %v1487_v28  ;;  %1331 = vmatprep.subr.bf16.mxu0 %v1488_v29  ;;  %v1504_v28 = vld [vmem:[#allocation7 + $0x200] sm:$0xff]  }
  0x52   :  { %1311 = vmatprep.subr.bf16.mxu1 %v1490_v31  ;;  %v1505_v29 = vld [vmem:[#allocation7 + $0x1c0] sm:$0xff]   ;;  %v1508_v31 = vld [vmem:[#allocation7 + $0x208] sm:$0xff]  }
  0x54   :  { %1332 = vmatpush3.bf16.msra.mxu0 %v1489_v30  ;;  %v1506_v30 = vld [vmem:[#allocation7 + $0x188] sm:$0xff]  }
  0x55   :  { %1312 = vmatpush3.bf16.msra.mxu1 %v1491_v32  ;;  %1333 = vmatprep.subr.bf16.mxu0 %v1492_v33  ;;  %v1507_v32 = vld [vmem:[#allocation7 + $0x148] sm:$0xff]  }
  0x56   :  { %1409 = vmatprep.subr.bf16.mxu1 %v1641_v0  ;;  %v1509_v33 = vld [vmem:[#allocation7 + $0x1c8] sm:$0xff]  }
  0x58   :  { %1334 = vmatpush3.bf16.msra.mxu0 %v1493_v34  ;;  %v1510_v34 = vld [vmem:[#allocation7 + $0x190] sm:$0xff]  }
  0x59   :  { %1350 = vmatprep.subr.bf16.mxu0 %v1502_v26 }
 0x10e   :  { %v132_v36 = vpop.f32.mrb[0].mxu0 }
 0x10f   :  { %v1754_v38 = vadd.f32 %v1196_v35, %v132_v36  ;;  %v1407_v39 = vpop.f32.mrb[1].mxu0  ;;  %v1511_v36 = vld [vmem:[#allocation7 + $0x150] sm:$0xff]  }
 0x110   :  { %v135_v41 = vpop.f32.mrb[2].mxu0  ;;  %v1514_v39 = vld [vmem:[#allocation7 + $0x198] sm:$0xff]  }
 0x111   :  { %v144_v42 = vmul.f32 %v1200_v37, %v1754_v38  ;;  %v1760_v43 = vadd.f32 %v1196_v35, %v135_v41  ;;  %v1408_v44 = vpop.f32.mrb[3].mxu0  ;;  %v1512_v35 = vld [vmem:[#allocation7 + $0x210] sm:$0xff]   ;;  %v1516_v41 = vld [vmem:[#allocation7 + $0x218] sm:$0xff]  }
 0x112   :  { %v1518_v44 = vld [vmem:[#allocation7 + $0x1a0] sm:$0xff]  }
 0x113   :  { %v151_v45 = vadd.f32 %v1201_v40, %v144_v42  ;;  %v145_v46 = vmul.f32 %v1200_v37, %v1760_v43  ;;  %v1513_v37 = vld [vmem:[#allocation7 + $0x1d0] sm:$0xff]   ;;  %v1517_v42 = vld [vmem:[#allocation7 + $0x1d8] sm:$0xff]  }
 0x115   :  { %v153_v47 = vmax.f32 %v151_v45, 0.0  ;;  %v152_v48 = vadd.f32 %v1201_v40, %v145_v46  ;;  %v1515_v40 = vld [vmem:[#allocation7 + $0x158] sm:$0xff]   ;;  %v1519_v45 = vld [vmem:[#allocation7 + $0x160] sm:$0xff]  }
 0x116   :  { %v1520_v46 = vld [vmem:[#allocation7 + $0x220] sm:$0xff]  }
 0x117   :  { %v158_v49 = vrot.slane %v153_v47, 6  ;;  %v154_v50 = vmax.f32 %v152_v48, 0.0  ;;  %v1521_v47 = vld [vmem:[#allocation7 + $0x1e0] sm:$0xff]   ;;  %v1522_v48 = vld [vmem:[#allocation7 + $0x1a8] sm:$0xff]  }
 0x119   :  { %v159_v51 = vrot.slane %v154_v50, 6  ;;  %v164_v52 = vsel %vm157_vm2, 0.0, %v158_v49  ;;  %v1524_v50 = vld [vmem:[#allocation7 + $0x228] sm:$0xff]  }
 0x11a   :  { %v169_v55 = vrot.slane %v164_v52, 1  ;;  %v185_v59 = vrot.slane %v164_v52, 3  ;;  %v177_v62 = vrot.slane %v164_v52, 2  ;;  %v193_v22 = vrot.slane %v164_v52, 4  ;;  %v1526_v52 = vld [vmem:[#allocation7 + $0x1b0] sm:$0xff]  }
 0x11b   :  { %v160_v53 = vsel %vm157_vm2, %v158_v49, %v159_v51  ;;  %v165_v54 = vsel %vm157_vm2, %v159_v51, 0.0  ;;  %v1525_v51 = vld [vmem:[#allocation7 + $0x1e8] sm:$0xff]  }
 0x11c   :  { %v180_v56 = vrot.slane %v165_v54, 2  ;;  %v170_v57 = vrot.slane %v160_v53, 1  ;;  %v172_v58 = vrot.slane %v165_v54, 1  ;;  %v186_v60 = vrot.slane %v160_v53, 3 }
 0x11d   :  { %v188_v61 = vrot.slane %v165_v54, 3  ;;  %v178_v63 = vrot.slane %v160_v53, 2  ;;  %v1245_v10 = vpack.c.bf16 %v160_v53, %v158_v49  ;;  %v196_v19 = vrot.slane %v165_v54, 4  ;;  %v1523_v49 = vld [vmem:[#allocation7 + $0x168] sm:$0xff]   ;;  %v1528_v54 = vld [vmem:[#allocation7 + $0x230] sm:$0xff]  }
 0x11e   :  { %v171_v1 = vsel %vm168_vm3, %v169_v55, %v170_v57  ;;  %v173_v2 = vsel %vm168_vm3, %v170_v57, %v172_v58  ;;  %v187_v4 = vsel %vm184_vm4, %v185_v59, %v186_v60  ;;  %v194_v20 = vrot.slane %v160_v53, 4  ;;  %v1527_v53 = vld [vmem:[#allocation7 + $0x170] sm:$0xff]   ;;  %v1531_v57 = vld [vmem:[#allocation7 + $0x178] sm:$0xff]  }
 0x11f   :  { %v201_v3 = vpack.c.bf16 %v173_v2, %v171_v1  ;;  %v189_v5 = vsel %vm184_vm4, %v186_v60, %v188_v61  ;;  %v179_v7 = vsel %vm176_vm5, %v177_v62, %v178_v63  ;;  %v181_v11 = vsel %vm176_vm5, %v178_v63, %v180_v56  ;;  %v1529_v55 = vld [vmem:[#allocation7 + $0x1f0] sm:$0xff]   ;;  %v1530_v56 = vld [vmem:[#allocation7 + $0x1b8] sm:$0xff]  }
 0x120   :  { %v203_v9 = vpack.c.bf16 %v189_v5, %v187_v4  ;;  %v202_v12 = vpack.c.bf16 %v181_v11, %v179_v7  ;;  %v195_v23 = vsel %vm192_vm9, %v193_v22, %v194_v20  ;;  %v197_v24 = vsel %vm192_vm9, %v194_v20, %v196_v19  ;;  %v1532_v58 = vld [vmem:[#allocation7 + $0x238] sm:$0xff]   ;;  %v1202_v62 = vld [vmem:[%s1848_s6] ss:$0 sm:$0xff]  ;;  %v1248_v19 = vld [vmem:[%s1846_s4 + $0x1] ss:$0 sm:$0xff] }
 0x121   :  { %562 = vmatprep.mubr.bf16.mxu1 %v201_v3  ;;  %v204_v25 = vpack.c.bf16 %v197_v24, %v195_v23  ;;  %v1533_v59 = vld [vmem:[#allocation7 + $0x1f8] sm:$0xff]  }
 0x122   :  { %603 = vmatprep.mubr.bf16.mxu0 %v203_v9  ;;  %1246 = vmatmul.mubr.msk.bf16.vlgmr.msra.gmra.mrb[0].mxu1 %vm1771_vm8, %v1245_v10 }
 0x123   :  { %604 = vmatmul.mubr.bf16.vlgmr.msra.gmra.mrb[4].mxu0 %v202_v12  ;;  %1410 = vmatpush3.bf16.msra.mxu1 %v1494_v8 }
 0x124   :  { %1411 = vmatprep.subr.bf16.mxu1 %v1641_v0  ;;  %1425 = vmatprep.mubr.msk.bf16.mxu1 %vm1642_vm0, %v1641_v0 }
 0x125   :  { %1351 = vmatpush3.bf16.msra.mxu0 %v1503_v27 }
 0x126   :  { %1352 = vmatprep.subr.bf16.mxu0 %v1506_v30 }
 0x127   :  { %1412 = vmatpush3.bf16.msra.mxu1 %v1495_v13 }
 0x128   :  { %1413 = vmatprep.subr.bf16.mxu1 %v1641_v0 }
 0x129   :  { %1353 = vmatpush3.bf16.msra.mxu0 %v1507_v32 }
 0x12a   :  { %1354 = vmatprep.subr.bf16.mxu0 %v1510_v34 }
 0x12b   :  { %1414 = vmatpush3.bf16.msra.mxu1 %v1496_v14 }
 0x12c   :  { %1415 = vmatprep.subr.bf16.mxu1 %v1641_v0 }
 0x12d   :  { %1355 = vmatpush3.bf16.msra.mxu0 %v1511_v36 }
 0x12e   :  { %1356 = vmatprep.subr.bf16.mxu0 %v1514_v39 }
 0x12f   :  { %1416 = vmatpush3.bf16.msra.mxu1 %v1497_v15 }
 0x130   :  { %1417 = vmatprep.subr.bf16.mxu1 %v1641_v0 }
 0x131   :  { %1357 = vmatpush3.bf16.msra.mxu0 %v1515_v40 }
 0x132   :  { %1358 = vmatprep.subr.bf16.mxu0 %v1518_v44 }
 0x133   :  { %1418 = vmatpush3.bf16.msra.mxu1 %v1498_v16  ;;  %v1247_v16 = vld [vmem:[%s1845_s3 + $0x1] ss:$0 sm:$0xff] }
 0x134   :  { %1419 = vmatprep.subr.bf16.mxu1 %v1641_v0 }
 0x135   :  { %1359 = vmatpush3.bf16.msra.mxu0 %v1519_v45 }
 0x136   :  { %1360 = vmatprep.subr.bf16.mxu0 %v1522_v48 }
 0x137   :  { %1420 = vmatpush3.bf16.msra.mxu1 %v1499_v17 }
 0x138   :  { %1421 = vmatprep.subr.bf16.mxu1 %v1641_v0 }
 0x139   :  { %1361 = vmatpush3.bf16.msra.mxu0 %v1523_v49 }
 0x13a   :  { %1362 = vmatprep.subr.bf16.mxu0 %v1526_v52 }
 0x13b   :  { %1422 = vmatpush3.bf16.msra.mxu1 %v1500_v18 }
 0x13c   :  { %1423 = vmatprep.subr.bf16.mxu1 %v1641_v0 }
 0x13d   :  { %1363 = vmatpush3.bf16.msra.mxu0 %v1527_v53 }
 0x13e   :  { %1364 = vmatprep.subr.bf16.mxu0 %v1530_v56 }
 0x13f   :  { %1424 = vmatpush3.bf16.msra.mxu1 %v1501_v21 }
 0x140   :  { %1372 = vmatprep.subr.bf16.mxu1 %v1504_v28 }
 0x141   :  { %1365 = vmatpush3.bf16.msra.mxu0 %v1531_v57 }
 0x142   :  { %1426 = vmatmul.mubr.bf16.vlgmr.msra.gmra.mrb[4].mxu1 %v204_v25  ;;  %1429 = vmatprep.subr.bf16.mxu0 %v1641_v0 }
 0x143   :  { %1373 = vmatpush3.bf16.msra.mxu1 %v1505_v29 }
 0x144   :  { %1374 = vmatprep.subr.bf16.mxu1 %v1508_v31 }
 0x147   :  { %1375 = vmatpush3.bf16.msra.mxu1 %v1509_v33 }
 0x148   :  { %1376 = vmatprep.subr.bf16.mxu1 %v1512_v35 }
 0x14b   :  { %1377 = vmatpush3.bf16.msra.mxu1 %v1513_v37 }
 0x14c   :  { %1378 = vmatprep.subr.bf16.mxu1 %v1516_v41 }
 0x14f   :  { %1379 = vmatpush3.bf16.msra.mxu1 %v1517_v42 }
 0x150   :  { %1380 = vmatprep.subr.bf16.mxu1 %v1520_v46 }
 0x153   :  { %1381 = vmatpush3.bf16.msra.mxu1 %v1521_v47 }
 0x154   :  { %1382 = vmatprep.subr.bf16.mxu1 %v1524_v50 }
 0x157   :  { %1383 = vmatpush3.bf16.msra.mxu1 %v1525_v51 }
 0x158   :  { %1384 = vmatprep.subr.bf16.mxu1 %v1528_v54 }
 0x15b   :  { %1385 = vmatpush3.bf16.msra.mxu1 %v1529_v55  ;;  %v1534_v55 = vld [vmem:[#allocation7 + $0x240] sm:$0xff]  }
 0x15c   :  { %1386 = vmatprep.subr.bf16.mxu1 %v1532_v58 }
 0x15f   :  { %1387 = vmatpush3.bf16.msra.mxu1 %v1533_v59 }
 0x1f5   :  { %v1313_v60 = vpop.f32.mrb[0].mxu1 }
 0x1f6   :  { %v1335_v61 = vpop.f32.mrb[4].mxu0  ;;  %v1314_v63 = vpop.f32.mrb[1].mxu1 }
 0x1f7   :  { %v1315_v1 = vadd.f32 %v1314_v63, %v1313_v60  ;;  %v1336_v2 = vpop.f32.mrb[5].mxu0  ;;  %v1316_v3 = vpop.f32.mrb[2].mxu1  ;;  %v1536_v63 = vld [vmem:[#allocation7 + $0x250] sm:$0xff]  }
 0x1f8   :  { %v1337_v4 = vadd.f32 %v1336_v2, %v1335_v61  ;;  %v1338_v5 = vpop.f32.mrb[6].mxu0  ;;  %v1317_v7 = vpop.f32.mrb[3].mxu1  ;;  %v1538_v2 = vld [vmem:[#allocation7 + $0x260] sm:$0xff]  }
 0x1f9   :  { %v565_v8 = vadd.f32 %v1315_v1, %v1202_v62  ;;  %v1318_v9 = vadd.f32 %v1317_v7, %v1316_v3  ;;  %v1339_v10 = vpop.f32.mrb[7].mxu0  ;;  %v1537_v1 = vld [vmem:[#allocation7 + $0x258] sm:$0xff]   ;;  %v1540_v3 = vld [vmem:[#allocation7 + $0x270] sm:$0xff]  }
 0x1fa   :  { %v1340_v11 = vadd.f32 %v1339_v10, %v1338_v5 }
 0x1fb   :  { %v568_v12 = vadd.f32 %v1318_v9, %v1202_v62  ;;  %v606_v13 = vadd.f32 %v1337_v4, %v565_v8  ;;  %v1535_v62 = vld [vmem:[#allocation7 + $0x248] sm:$0xff]   ;;  %v1541_v4 = vld [vmem:[#allocation7 + $0x278] sm:$0xff]   ;;  %v1249_v8 = vld [vmem:[%s1848_s6 + $0x1] ss:$0 sm:$0xff]  ;;  %s1644_s6 = smov [#allocation8]  }
 0x1fc   :  { %s1183_s9 = sshll.u32 %s1644_s6, 4  ;;  %s1184_s9 = int_to_ptr.vmem [resolvable:$true] %s1183_s9 }
 0x1fd   :  { %v609_v14 = vadd.f32 %v1340_v11, %v568_v12  ;;  %s1608_s10 = scalar_lea.vmem %s1184_s9, 256  ;;  %p1613_p11 = scmp.lt.s32.totalorder %s1184_s9, %s1184_s9 }
 0x1fe   :  { %p1609_p10 = scmp.ne.s32.totalorder %s1184_s9, %s1608_s10  ;;  %p1614_p12 = scmp.lt.s32.totalorder %s1608_s10, %s1608_s10 }
 0x200   :  { %p1615_p13 = por %p1614_p12, %p1613_p11 }
 0x202   :  { %p1616_p0 = pnand %p1615_p13, %p1609_p10 }
 0x215   :  { %v646_v15 = vpop.f32.mrb[4].mxu1 }
 0x216   :  { %v647_v17 = vadd.f32 %v646_v15, %v606_v13  ;;  %v1427_v18 = vpop.f32.mrb[5].mxu1 }
 0x217   :  { %v649_v20 = vpop.f32.mrb[6].mxu1 }
 0x218   :  { %v658_v21 = vmul.f32 %v1247_v16, %v647_v17  ;;  %v650_v22 = vadd.f32 %v649_v20, %v609_v14  ;;  %v1428_v23 = vpop.f32.mrb[7].mxu1 }
 0x21a   :  { %v665_v24 = vadd.f32 %v1248_v19, %v658_v21  ;;  %v659_v25 = vmul.f32 %v1247_v16, %v650_v22 }
 0x21c   :  { %v667_v26 = vmax.f32 %v665_v24, 0.0  ;;  %v666_v27 = vadd.f32 %v1248_v19, %v659_v25  ;;  %v1294_v25 = vld [vmem:[%s1849_s7] ss:$0 sm:$0xff] }
 0x21e   :  { %v671_v28 = vrot.slane %v667_v26, 6  ;;  %v668_v29 = vmax.f32 %v666_v27, 0.0 }
 0x220   :  { %v677_v30 = vsel %vm157_vm2, 0.0, %v671_v28  ;;  %v672_v31 = vrot.slane %v668_v29, 6 }
 0x221   :  { %v681_v32 = vrot.slane %v677_v30, 1  ;;  %v695_v35 = vrot.slane %v677_v30, 3  ;;  %v688_v36 = vrot.slane %v677_v30, 2  ;;  %v702_v49 = vrot.slane %v677_v30, 4 }
 0x222   :  { %v673_v33 = vsel %vm157_vm2, %v671_v28, %v672_v31  ;;  %v678_v34 = vsel %vm157_vm2, %v672_v31, 0.0 }
 0x223   :  { %v691_v37 = vrot.slane %v678_v34, 2  ;;  %v705_v39 = vrot.slane %v678_v34, 4  ;;  %v682_v40 = vrot.slane %v673_v33, 1  ;;  %v684_v41 = vrot.slane %v678_v34, 1 }
 0x224   :  { %v696_v42 = vrot.slane %v673_v33, 3  ;;  %v698_v44 = vrot.slane %v678_v34, 3  ;;  %v1292_v45 = vpack.c.bf16 %v673_v33, %v671_v28  ;;  %v689_v46 = vrot.slane %v673_v33, 2 }
 0x225   :  { %v683_v47 = vsel %vm168_vm3, %v681_v32, %v682_v40  ;;  %v685_v48 = vsel %vm168_vm3, %v682_v40, %v684_v41  ;;  %v703_v50 = vrot.slane %v673_v33, 4 }
 0x226   :  { %v710_v51 = vpack.c.bf16 %v685_v48, %v683_v47  ;;  %v697_v52 = vsel %vm184_vm4, %v695_v35, %v696_v42  ;;  %v699_v53 = vsel %vm184_vm4, %v696_v42, %v698_v44  ;;  %v690_v54 = vsel %vm176_vm5, %v688_v36, %v689_v46 }
 0x227   :  { %v712_v56 = vpack.c.bf16 %v699_v53, %v697_v52  ;;  %v692_v57 = vsel %vm176_vm5, %v689_v46, %v691_v37  ;;  %v704_v58 = vsel %vm192_vm9, %v702_v49, %v703_v50  ;;  %v706_v59 = vsel %vm192_vm9, %v703_v50, %v705_v39 }
 0x228   :  { %1072 = vmatprep.mubr.bf16.mxu0 %v710_v51  ;;  %v711_v60 = vpack.c.bf16 %v692_v57, %v690_v54  ;;  %v713_v61 = vpack.c.bf16 %v706_v59, %v704_v58 }
 0x229   :  { %1113 = vmatprep.mubr.bf16.mxu1 %v712_v56  ;;  %1293 = vmatmul.mubr.msk.bf16.vlgmr.msra.gmra.mrb[8].mxu0 %vm1771_vm8, %v1292_v45 }
 0x22a   :  { %1114 = vmatmul.mubr.bf16.vlgmr.msra.gmra.mrb[8].mxu1 %v711_v60  ;;  %1430 = vmatpush3.bf16.msra.mxu0 %v1534_v55 }
 0x22b   :  { %1431 = vmatprep.subr.bf16.mxu0 %v1641_v0  ;;  %1445 = vmatprep.mubr.msk.bf16.mxu0 %vm1642_vm0, %v1641_v0 }
 0x22e   :  { %1432 = vmatpush3.bf16.msra.mxu0 %v1535_v62 }
 0x22f   :  { %1433 = vmatprep.subr.bf16.mxu0 %v1641_v0 }
 0x232   :  { %1434 = vmatpush3.bf16.msra.mxu0 %v1536_v63 }
 0x233   :  { %1435 = vmatprep.subr.bf16.mxu0 %v1641_v0 }
 0x236   :  { %1436 = vmatpush3.bf16.msra.mxu0 %v1537_v1 }
 0x237   :  { %1437 = vmatprep.subr.bf16.mxu0 %v1641_v0 }
 0x23a   :  { %1438 = vmatpush3.bf16.msra.mxu0 %v1538_v2 }
 0x23b   :  { %1439 = vmatprep.subr.bf16.mxu0 %v1641_v0 }
 0x23e   :  { %1440 = vmatpush3.bf16.msra.mxu0 %v1539_v6 }
 0x23f   :  { %1441 = vmatprep.subr.bf16.mxu0 %v1641_v0 }
 0x242   :  { %1442 = vmatpush3.bf16.msra.mxu0 %v1540_v3 }
 0x243   :  { %1443 = vmatprep.subr.bf16.mxu0 %v1641_v0 }
 0x246   :  { %1444 = vmatpush3.bf16.msra.mxu0 %v1541_v4 }
 0x249   :  { %1446 = vmatmul.mubr.bf16.vlgmr.msra.gmra.mrb[12].mxu0 %v713_v61 }
 0x2fc   :  { %v1366_v5 = vpop.f32.mrb[8].mxu0 }
 0x2fd   :  { %v1388_v7 = vpop.f32.mrb[8].mxu1  ;;  %v1367_v9 = vpop.f32.mrb[9].mxu0 }
 0x2fe   :  { %v1368_v10 = vadd.f32 %v1367_v9, %v1366_v5  ;;  %v1389_v11 = vpop.f32.mrb[9].mxu1  ;;  %v1369_v12 = vpop.f32.mrb[10].mxu0 }
 0x2ff   :  { %v1390_v13 = vadd.f32 %v1389_v11, %v1388_v7  ;;  %v1391_v14 = vpop.f32.mrb[10].mxu1  ;;  %v1370_v15 = vpop.f32.mrb[11].mxu0 }
 0x300   :  { %v1075_v16 = vadd.f32 %v1368_v10, %v1249_v8  ;;  %v1371_v17 = vadd.f32 %v1370_v15, %v1369_v12  ;;  %v1392_v18 = vpop.f32.mrb[11].mxu1 }
 0x301   :  { %v1393_v19 = vadd.f32 %v1392_v18, %v1391_v14 }
 0x302   :  { %v1078_v0 = vadd.f32 %v1371_v17, %v1249_v8  ;;  %v1116_v20 = vadd.f32 %v1390_v13, %v1075_v16 }
 0x304   :  { %v1119_v21 = vadd.f32 %v1393_v19, %v1078_v0 }
 0x31c   :  { %v1156_v22 = vpop.f32.mrb[12].mxu0 }
 0x31d   :  { %v1157_v23 = vadd.f32 %v1156_v22, %v1116_v20  ;;  %v1447_v24 = vpop.f32.mrb[13].mxu0 }
 0x31e   :  { %v1159_v26 = vpop.f32.mrb[14].mxu0 }
 0x31f   :  { %v1163_v27 = vadd.f32 %v1157_v23, %v1754_v38  ;;  %v1160_v28 = vadd.f32 %v1159_v26, %v1119_v21  ;;  %v1448_v29 = vpop.f32.mrb[15].mxu0 }
 0x321   :  { %vm1172_vm10 = vcmp.gt.f32.partialorder %v1163_v27, %v1294_v25  ;;  %v1164_v30 = vadd.f32 %v1160_v28, %v1760_v43 }
 0x322   :  { %v1174_v31 = vsel %vm1172_vm10, %v1163_v27, 0.0 }
 0x323   :  { %1176 = vst [vmem:[#allocation8] sm:$0xff] %v1174_v31  ;;  %vm1173_vm11 = vcmp.gt.f32.partialorder %v1164_v30, %v1294_v25 }
 0x324   :  { %v1175_v32 = vsel %vm1173_vm11, %v1164_v30, 0.0 }
 0x325   :  { %1177 = vst [vmem:[#allocation8 + $0x8] sm:$0xff] %v1175_v32 }
 0x326   :  { %1619 = shalt.err (!%p1616_p0)
}
 0x327   :  { %s1620_s12 = scalar_lea.hbm %s1850_s8, 256 }
 0x328   :  { %p1621_p1 = scmp.ne.s32.totalorder %s1850_s8, %s1620_s12  ;;  %p1624_p2 = scmp.lt.u32.totalorder %s1620_s12, %s1850_s8 }
 0x32a   :  { %p1626_p3 = pnand %p1624_p2, %p1621_p1 }
 0x32c   :  { %1629 = shalt.err (!%p1626_p3)
}
 0x32d   :  { %s1645_s19 = smov 128   ;;  %s1646_s20 = smov 8  }
 0x32e   :  { %1189 = dma.vmem_to_hbm [thread:$0]  %s1184_s9, 256, %s1850_s8, [#allocation4], %s1645_s19, %s1645_s19, %s1646_s20  }
 0x32f   :  { %1634 = dma.done.wait [#allocation4], 256  }
 0x330   :  { %1635 = vsyncadd [#allocation4], 4294967040 }
 0x331   :  { %1193 = vsyncpa [#allocation3], 1 }
 0x332   :  { %1194 = vsyncpa [#allocation6], 1 }
 0x333   :  { %1195 = vsyncpa [#allocation4], 1 }

</bundles_post_ra>
